<compile_context>
chip_gen: v6e
topology: v6e:2x2x1
jax: 0.10.0
libtpu: 0.0.40
codegen_flags: <defaults>
</compile_context>

<pallas_src>
import functools
import math

import jax
import jax.numpy as jnp
from jax.experimental import pallas as pl
from jax.experimental.pallas import tpu as pltpu

D = 512          # fixed by RMSNorm's nn.Linear(512, 512)
EPS = 1e-8
ALPHA = 0.0
MAX_TM = 512     # rows per grid step (fits default scoped VMEM on v5e/v6e/v7x)


# ---------------------------------------------------------------------------
# Kernels
# ---------------------------------------------------------------------------

def _rmsnorm_kernel(x_ref, o_ref):
    """alpha == 0.0 fast path: pure RMS normalization, no weight."""
    x = x_ref[...].astype(jnp.float32)
    ms = jnp.mean(x * x, axis=-1, keepdims=True) + EPS
    o_ref[...] = (x * jax.lax.rsqrt(ms)).astype(o_ref.dtype)


def _rmsnorm_linear_kernel(x_ref, w_ref, o_ref, *, alpha):
    """General path (alpha != 0): RMS norm blended with nn.Linear (x @ W.T)."""
    x = x_ref[...].astype(jnp.float32)
    ms = jnp.mean(x * x, axis=-1, keepdims=True) + EPS
    scaled = x * jax.lax.rsqrt(ms)
    # W is (out_features, in_features); contract its in-features axis directly.
    lin = jax.lax.dot_general(
        x, w_ref[...],
        dimension_numbers=(((1,), (1,)), ((), ())),
        preferred_element_type=jnp.float32)
    o_ref[...] = ((1.0 - alpha) * scaled + alpha * lin).astype(o_ref.dtype)


# ---------------------------------------------------------------------------
# Wrapper
# ---------------------------------------------------------------------------

def _choose_tm(m, dtype):
    """Largest row tile <= MAX_TM, respecting sublane packing for narrow dtypes."""
    itemsize = jnp.dtype(dtype).itemsize
    min_sub = max(8, 32 // itemsize)       # 8 (f32), 16 (bf16), 32 (int8)
    if m >= MAX_TM:
        return MAX_TM                      # MAX_TM is a multiple of 32
    return max(min_sub, ((m + min_sub - 1) // min_sub) * min_sub)


def rmsnorm_pallas(x, w, alpha=ALPHA):
    """Equivalent of RMSNorm().forward(x). x: [..., 512], w: [512, 512] (out, in)."""
    orig_shape = x.shape
    assert orig_shape[-1] == D, f"last dim must be {D}"
    x2d = x.reshape(-1, D)
    M = x2d.shape[0]

    tm = _choose_tm(M, x2d.dtype)
    grid = (pl.cdiv(M, tm),)
    row_spec = pl.BlockSpec((tm, D), lambda i: (i, 0))
    out_shape = jax.ShapeDtypeStruct((M, D), x.dtype)
    compiler_params = pltpu.CompilerParams(dimension_semantics=("parallel",))

    if alpha == 0.0:
        # Static specialization: the linear branch is multiplied by 0.0, so we
        # never load the weight and never touch the MXU.
        out = pl.pallas_call(
            _rmsnorm_kernel,
            out_shape=out_shape,
            grid_spec=pltpu.PrefetchScalarGridSpec(
                num_scalar_prefetch=0,
                grid=grid,
                in_specs=[row_spec],
                out_specs=row_spec,
            ),
            compiler_params=compiler_params,
        )(x2d)
    else:
        w32 = w.astype(jnp.float32)        # cast once, outside the grid loop
        out = pl.pallas_call(
            functools.partial(_rmsnorm_linear_kernel, alpha=float(alpha)),
            out_shape=out_shape,
            grid_spec=pltpu.PrefetchScalarGridSpec(
                num_scalar_prefetch=0,
                grid=grid,
                in_specs=[
                    row_spec,
                    pl.BlockSpec((D, D), lambda i: (0, 0)),   # weight, resident
                ],
                out_specs=row_spec,
            ),
            compiler_params=compiler_params,
        )(x2d, w32)

    return out.reshape(orig_shape)


def norm_forward(x, w, normalization=True, alpha=ALPHA):
    """Equivalent of Norm(normalization).forward(x)."""
    if not normalization:
        return x  # nn.Identity
    return rmsnorm_pallas(x, w, alpha=alpha)


# ---------------------------------------------------------------------------
# Self-test
# ---------------------------------------------------------------------------

if __name__ == "__main__":
    key = jax.random.PRNGKey(0)
    kx, kw, kx2 = jax.random.split(key, 3)

    # Small shapes consistent with the module: batch=2, seq=8, hidden=512
    # (hidden fixed by nn.Linear(512, 512)).
    B, S = 2, 8
    x = jax.random.normal(kx, (B, S, D), dtype=jnp.float32)

    # Deterministic nn.Linear(512, 512, bias=False)-style weight.
    bound = 1.0 / math.sqrt(D)
    w = jax.random.uniform(kw, (D, D), dtype=jnp.float32,
                           minval=-bound, maxval=bound)

    def ref_rmsnorm(xv):
        ms = jnp.mean(xv * xv, axis=-1, keepdims=True) + EPS
        return xv * jax.lax.rsqrt(ms)      # (1-0)*scaled + 0*linear == scaled

    # normalization=True path (alpha == 0.0 -> pure RMSNorm)
    out = jax.block_until_ready(norm_forward(x, w, normalization=True))
    assert out.shape == x.shape
    assert jnp.allclose(out, ref_rmsnorm(x), atol=1e-5, rtol=1e-5)

    # Ragged row count (exercises partial last block / masked writeback).
    x_odd = jax.random.normal(kx2, (3, 5, D), dtype=jnp.float32)
    out_odd = jax.block_until_ready(norm_forward(x_odd, w, normalization=True))
    assert jnp.allclose(out_odd, ref_rmsnorm(x_odd), atol=1e-5, rtol=1e-5)

    # identity path (normalization=False)
    out_id = jax.block_until_ready(norm_forward(x, w, normalization=False))
    assert jnp.array_equal(out_id, x)

    print("KERNEL_OK")
</pallas_src>

<mosaic_0001>
module attributes {stable_mosaic.version = 11 : i64} {
  func.func @_rmsnorm_kernel(%arg0: i32, %arg1: memref<16x512xf32, #tpu.memory_space<vmem>>, %arg2: memref<16x512xf32, #tpu.memory_space<vmem>>) attributes {dimension_semantics = [#tpu.dimension_semantics<parallel>], iteration_bounds = array<i64: 1>, scalar_prefetch = 0 : i64, scratch_operands = 0 : i64, tpu.core_type = #tpu.core_type<tc>, window_params = [{transform_indices = @transform_0, window_bounds = array<i64: 16, 512>}, {transform_indices = @transform_1, window_bounds = array<i64: 16, 512>}]} {
    %c0 = arith.constant 0 : index
    %c0_0 = arith.constant 0 : index
    %0 = vector.load %arg1[%c0, %c0_0] : memref<16x512xf32, #tpu.memory_space<vmem>>, vector<16x512xf32>
    %1 = arith.mulf %0, %0 : vector<16x512xf32>
    %cst = arith.constant dense<0.000000e+00> : vector<16xf32>
    %2 = vector.multi_reduction <add>, %1, %cst [1] : vector<16x512xf32> to vector<16xf32>
    %3 = vector.shape_cast %2 : vector<16xf32> to vector<16x1xf32>
    %cst_1 = arith.constant 5.120000e+02 : f32
    %4 = vector.broadcast %cst_1 : f32 to vector<16x1xf32>
    %5 = arith.divf %3, %4 : vector<16x1xf32>
    %cst_2 = arith.constant 9.99999993E-9 : f32
    %6 = vector.broadcast %cst_2 : f32 to vector<16x1xf32>
    %7 = arith.addf %5, %6 : vector<16x1xf32>
    %8 = math.rsqrt %7 : vector<16x1xf32>
    %9 = vector.broadcast %8 : vector<16x1xf32> to vector<16x512xf32>
    %10 = arith.mulf %0, %9 : vector<16x512xf32>
    %c0_3 = arith.constant 0 : index
    %c0_4 = arith.constant 0 : index
    %11 = vector.load %arg2[%c0_3, %c0_4] : memref<16x512xf32, #tpu.memory_space<vmem>>, vector<16x512xf32>
    tpu.vector_store %arg2[%c0_3, %c0_4], %10 {strides = array<i32>} : memref<16x512xf32, #tpu.memory_space<vmem>>, vector<16x512xf32>,
    return
  }
  func.func @transform_0(%arg0: i32) -> (i32, i32) {
    %c0_i32 = arith.constant 0 : i32
    %c0_i32_0 = arith.constant 0 : i32
    return %arg0, %c0_i32 : i32, i32
  }
  func.func @transform_1(%arg0: i32) -> (i32, i32) {
    %c0_i32 = arith.constant 0 : i32
    %c0_i32_0 = arith.constant 0 : i32
    return %arg0, %c0_i32 : i32, i32
  }
}

</mosaic_0001>

<bundles_post_ra>
// kernel: tpu_custom_call.1
= control target key start
LH: loop header
LB: loop body
LE: loop exit
PB: predicated region body
PF: predicated region fallthrough
CT: control target
= control target key end

     0   :  { %6 = vsyncpa [#allocation3], 0  ;;  %s167_s0 = inlined_call_operand.hbm [shape: f32[16,512], index: 0, kind: input, shape index: {}]   ;;  %s168_s1 = inlined_call_operand.hbm [shape: f32[16,512], index: 1, kind: output, shape index: {}]  }
   0x1   :  { %7 = vsyncpa [#allocation4], 0  ;;  %s141_s6 = smov [#allocation2]  }
   0x2   :  { %s13_s7 = sshll.u32 %s141_s6, 4  ;;  %s14_s7 = int_to_ptr.vmem [resolvable:$true] %s13_s7 }
   0x3   :  { %s105_s8 = scalar_lea.vmem %s14_s7, 1024  ;;  %p110_p1 = scmp.lt.s32.totalorder %s14_s7, %s14_s7 }
   0x4   :  { %p106_p0 = scmp.ne.s32.totalorder %s14_s7, %s105_s8  ;;  %p111_p2 = scmp.lt.s32.totalorder %s105_s8, %s105_s8 }
   0x6   :  { %p112_p3 = por %p111_p2, %p110_p1 }
   0x8   :  { %p113_p4 = pnand %p112_p3, %p106_p0 }
   0xa   :  { %116 = shalt.err (!%p113_p4)
}
   0xb   :  { %s142_s9 = smov 512   ;;  %s143_s10 = smov 32  }
   0xc   :  { %19 = dma.hbm_to_vmem [thread:$0]  %s167_s0, 1024, %s14_s7, [#allocation3], %s142_s9, %s142_s9, %s143_s10  }
   0xd   :  { %137 = dma.done.wait [#allocation3], 1024  }
   0xe   :  { %138 = vsyncadd [#allocation3], 4294966272  ;;  %v23_v0 = vld [vmem:[#allocation2] sm:$0xff]  ;;  %v24_v1 = vld [vmem:[#allocation2 + $0x8] sm:$0xff]  ;;  %s144_s0 = smov [#allocation5]  }
   0xf   :  { %v25_v2 = vld [vmem:[#allocation2 + $0x10] sm:$0xff]  ;;  %v26_v3 = vld [vmem:[#allocation2 + $0x18] sm:$0xff]  ;;  %v31_v4 = vmul.f32 %v23_v0, %v23_v0  ;;  %v32_v5 = vmul.f32 %v24_v1, %v24_v1  ;;  %v27_v7 = vld [vmem:[#allocation2 + $0x20] sm:$0xff]  ;;  %s77_s13 = sshll.u32 %s144_s0, 4  ;;  %s78_s13 = int_to_ptr.vmem [resolvable:$true] %s77_s13 }
  0x10   :  { %v33_v6 = vmul.f32 %v25_v2, %v25_v2  ;;  %v28_v8 = vld [vmem:[#allocation2 + $0x28] sm:$0xff]  ;;  %v29_v9 = vld [vmem:[#allocation2 + $0x30] sm:$0xff]  ;;  %v30_v10 = vld [vmem:[#allocation2 + $0x38] sm:$0xff]  ;;  %v35_v11 = vmul.f32 %v27_v7, %v27_v7  ;;  %v34_v13 = vmul.f32 %v26_v3, %v26_v3  ;;  %s117_s14 = scalar_lea.vmem %s78_s13, 1024  ;;  %p122_p6 = scmp.lt.s32.totalorder %s78_s13, %s78_s13 }
  0x11   :  { %v36_v12 = vmul.f32 %v28_v8, %v28_v8  ;;  %v39_v14 = vadd.f32 %v32_v5, %v31_v4  ;;  %v37_v15 = vmul.f32 %v29_v9, %v29_v9  ;;  %v38_v18 = vmul.f32 %v30_v10, %v30_v10  ;;  %p118_p5 = scmp.ne.s32.totalorder %s78_s13, %s117_s14  ;;  %p123_p7 = scmp.lt.s32.totalorder %s117_s14, %s117_s14 }
  0x13   :  { %v44_v16 = vadd.f32 %v36_v12, %v35_v11  ;;  %v40_v17 = vadd.f32 %v39_v14, %v33_v6  ;;  %p124_p8 = por %p123_p7, %p122_p6 }
  0x15   :  { %v45_v19 = vadd.f32 %v44_v16, %v37_v15  ;;  %v41_v20 = vadd.f32 %v40_v17, %v34_v13  ;;  %p125_p9 = pnand %p124_p8, %p118_p5 }
  0x17   :  { %42 = vadd.xlane.f32.xlu0 %v41_v20  ;;  %v46_v21 = vadd.f32 %v45_v19, %v38_v18 }
  0x1b   :  { %47 = vadd.xlane.f32.xlu0 %v46_v21 }
  0xa0   :  { %v43_v22 = vpop.xlane.xlu0 %42 }
  0xa1   :  { %v50_v23 = vmul.f32 0.001953125, %v43_v22 }
  0xa3   :  { %v52_v24 = vadd.f32 1e-08, %v50_v23 }
  0xa4   :  { %v48_v25 = vpop.xlane.xlu0 %47 }
  0xa5   :  { %93 = vrsqrt.f32 %v52_v24  ;;  %v51_v26 = vmul.f32 0.001953125, %v48_v25 }
  0xa7   :  { %v53_v27 = vadd.f32 1e-08, %v51_v26 }
  0xa9   :  { %95 = vrsqrt.f32 %v53_v27 }
  0xb2   :  { %v94_v28 = vpop.eup %93 }
  0xb3   :  { %v56_v29 = vmul.f32 %v94_v28, %v23_v0  ;;  %v57_v30 = vmul.f32 %v94_v28, %v24_v1  ;;  %v58_v31 = vmul.f32 %v94_v28, %v25_v2  ;;  %v59_v32 = vmul.f32 %v94_v28, %v26_v3 }
  0xb5   :  { %64 = vst [vmem:[#allocation5] sm:$0xff] %v56_v29  ;;  %65 = vst [vmem:[#allocation5 + $0x8] sm:$0xff] %v57_v30 }
  0xb6   :  { %66 = vst [vmem:[#allocation5 + $0x10] sm:$0xff] %v58_v31  ;;  %67 = vst [vmem:[#allocation5 + $0x18] sm:$0xff] %v59_v32  ;;  %v96_v33 = vpop.eup %95 }
  0xb7   :  { %v60_v34 = vmul.f32 %v96_v33, %v27_v7  ;;  %v61_v35 = vmul.f32 %v96_v33, %v28_v8  ;;  %v62_v36 = vmul.f32 %v96_v33, %v29_v9  ;;  %v63_v37 = vmul.f32 %v96_v33, %v30_v10 }
  0xb9   :  { %68 = vst [vmem:[#allocation5 + $0x20] sm:$0xff] %v60_v34  ;;  %69 = vst [vmem:[#allocation5 + $0x28] sm:$0xff] %v61_v35 }
  0xba   :  { %70 = vst [vmem:[#allocation5 + $0x30] sm:$0xff] %v62_v36  ;;  %71 = vst [vmem:[#allocation5 + $0x38] sm:$0xff] %v63_v37 }
  0xbb   :  { %128 = shalt.err (!%p125_p9)
}
  0xbc   :  { %83 = dma.vmem_to_hbm [thread:$0]  %s78_s13, 1024, %s168_s1, [#allocation4], %s142_s9, %s142_s9, %s143_s10  }
  0xbd   :  { %139 = dma.done.wait [#allocation4], 1024  }
  0xbe   :  { %140 = vsyncadd [#allocation4], 4294966272 }
  0xbf   :  { %87 = vsyncpa [#allocation3], 1 }
  0xc0   :  { %88 = vsyncpa [#allocation4], 1 }

</bundles_post_ra>
